<compile_context>
chip_gen: v5e
topology: v5e:2x2
jax: 0.10.0
libtpu: 0.0.40
codegen_flags: <defaults>
</compile_context>

<pallas_src>
import functools

import jax
import jax.numpy as jnp
from jax import lax
from jax.experimental import pallas as pl
from jax.experimental.pallas import tpu as pltpu


_VMEM_BLOCK_BUDGET = 32 * 1024 * 1024  # double-buffered block budget (v7x-safe)
_VMEM_LIMIT_BYTES = 48 * 1024 * 1024   # scoped VMEM limit (defaults: 16/32 MiB)


# ---------------------------------------------------------------------------
# Kernel 1: pool over the sequence axis (tiled) + L2-normalize
# ---------------------------------------------------------------------------
def _pool_norm_kernel(x_ref, o_ref, acc_ref, *, pool, eps, seq_len, s_tile):
    s = pl.program_id(1)
    n_s = pl.num_programs(1)

    @pl.when(s == 0)
    def _():
        if pool == "mean":
            acc_ref[...] = jnp.zeros(acc_ref.shape, acc_ref.dtype)
        else:
            acc_ref[...] = jnp.full(acc_ref.shape, -jnp.inf, acc_ref.dtype)

    x = x_ref[...]  # (TB, s_tile, D), native dtype
    if seq_len % s_tile != 0:
        # Mask sequence rows past the true length on the partial last s-block.
        valid = seq_len - s * s_tile
        row = lax.broadcasted_iota(jnp.int32, x.shape, 1)
        mask = row < valid
        if pool == "mean":
            x = jnp.where(mask, x, jnp.zeros_like(x))
        else:
            x = jnp.where(mask, x, jnp.full_like(x, -jnp.inf))

    if pool == "mean":
        acc_ref[...] += jnp.sum(x.astype(jnp.float32), axis=1)
    else:
        # max is exact in the native dtype; cast only the pooled (TB, D) result.
        acc_ref[...] = jnp.maximum(
            acc_ref[...], jnp.max(x, axis=1).astype(jnp.float32)
        )

    @pl.when(s == n_s - 1)
    def _():
        pooled = acc_ref[...]
        if pool == "mean":
            pooled = pooled * (1.0 / seq_len)
        norm = jnp.sqrt(jnp.sum(pooled * pooled, axis=-1, keepdims=True))
        o_ref[...] = (pooled / jnp.maximum(norm, eps)).astype(o_ref.dtype)


# ---------------------------------------------------------------------------
# Kernel 2: cosine-similarity matrix of the unit vectors (MXU)
# ---------------------------------------------------------------------------
def _cos_sim_kernel(t_ref, c_ref, o_ref):
    # (TM, D) x (TN, D) contracted over D -> (TM, TN); A.B^T with no in-kernel .T
    o_ref[...] = lax.dot_general(
        t_ref[...],
        c_ref[...],
        dimension_numbers=(((1,), (1,)), ((), ())),
        preferred_element_type=jnp.float32,
    )


# ---------------------------------------------------------------------------
# Tile selection
# ---------------------------------------------------------------------------
def _choose_pool_tiles(B, S, D, itemsize):
    """Pick (tile_b, s_tile) so 2 * tile_b * s_tile * D * itemsize <= budget."""
    if B < 8:
        tile_b = B                      # full batch dim (block == array dim)
    else:
        tile_b = min(256, (B // 8) * 8)  # 8-aligned, never larger than the array
    min_s = min(S, 8)
    while tile_b > 8 and 2 * tile_b * min_s * D * itemsize > _VMEM_BLOCK_BUDGET:
        tile_b = max(8, ((tile_b // 2) // 8) * 8)
    s_budget = _VMEM_BLOCK_BUDGET // max(2 * tile_b * D * itemsize, 1)
    if s_budget >= S:
        s_tile = S
    else:
        s_tile = min(S, max(8, (s_budget // 8) * 8))
    return tile_b, s_tile


def _choose_sim_tiles(b1_pad, b2_pad, D, itemsize):
    tm = min(b1_pad, 256)
    tn = min(b2_pad, 256)
    # Shrink the lhs tile if the double-buffered working set is too big.
    while tm > 8 and (2 * (tm + tn) * D * itemsize + 2 * tm * tn * 4) > _VMEM_BLOCK_BUDGET:
        tm = max(8, ((tm // 2) // 8) * 8)
    # v7x megacore: give both TensorCores a tile when the grid would be 1x1.
    if pl.cdiv(b1_pad, tm) * pl.cdiv(b2_pad, tn) == 1 and tm % 16 == 0:
        tm //= 2
    return tm, tn


# ---------------------------------------------------------------------------
# Wrappers
# ---------------------------------------------------------------------------
def _pool_normalize(x, pool, eps, out_dtype):
    """(B, S, D) -> (b_pad, D) pooled + L2-normalized vectors (rows >= B are junk)."""
    B, S, D = x.shape
    itemsize = jnp.dtype(x.dtype).itemsize
    tile_b, s_tile = _choose_pool_tiles(B, S, D, itemsize)
    n_b = pl.cdiv(B, tile_b)
    n_s = pl.cdiv(S, s_tile)
    b_pad = n_b * tile_b

    kernel = functools.partial(
        _pool_norm_kernel, pool=pool, eps=eps, seq_len=S, s_tile=s_tile
    )
    return pl.pallas_call(
        kernel,
        out_shape=jax.ShapeDtypeStruct((b_pad, D), out_dtype),
        grid=(n_b, n_s),
        in_specs=[pl.BlockSpec((tile_b, s_tile, D), lambda i, s: (i, s, 0))],
        out_specs=pl.BlockSpec((tile_b, D), lambda i, s: (i, 0)),
        scratch_shapes=[pltpu.VMEM((tile_b, D), jnp.float32)],
        compiler_params=pltpu.CompilerParams(
            dimension_semantics=("parallel", "arbitrary"),
            vmem_limit_bytes=_VMEM_LIMIT_BYTES,
        ),
    )(x)


def global_cos(txt, cld, pool="mean", cross_sim=True, *, eps=1e-8,
               sim_dtype=jnp.float32):
    """GlobalCos forward: pooled cosine similarity matrix (b1, b2)."""
    b1, _, d1 = txt.shape
    b2, _, d2 = cld.shape
    assert d1 == d2, "txt and cld must share the feature dimension"
    pool = "mean" if pool in ("mean", "avg") else "max"

    # sim_dtype=jnp.bfloat16 halves intermediate bytes and hits the MXU bf16
    # fast path (~1e-3 cosine accuracy cost); default f32 matches the reference.
    txt_n = _pool_normalize(txt, pool, eps, sim_dtype)  # (b1_pad, D)
    cld_n = _pool_normalize(cld, pool, eps, sim_dtype)  # (b2_pad, D)
    b1_pad, b2_pad = txt_n.shape[0], cld_n.shape[0]

    tm, tn = _choose_sim_tiles(b1_pad, b2_pad, d1, jnp.dtype(sim_dtype).itemsize)
    sim = pl.pallas_call(
        _cos_sim_kernel,
        out_shape=jax.ShapeDtypeStruct((b1_pad, b2_pad), jnp.float32),
        grid=(pl.cdiv(b1_pad, tm), pl.cdiv(b2_pad, tn)),
        in_specs=[
            pl.BlockSpec((tm, d1), lambda i, j: (i, 0)),
            pl.BlockSpec((tn, d1), lambda i, j: (j, 0)),
        ],
        out_specs=pl.BlockSpec((tm, tn), lambda i, j: (i, j)),
        compiler_params=pltpu.CompilerParams(
            dimension_semantics=("parallel", "parallel"),
            vmem_limit_bytes=_VMEM_LIMIT_BYTES,
        ),
    )(txt_n, cld_n)

    sim = sim[:b1, :b2]
    if not cross_sim and b2 == 1:
        sim = sim[:, 0]  # mirrors torch's .squeeze(1) in the non-cross path
    return sim


# ---------------------------------------------------------------------------
# Pure-JAX reference + self-test
# ---------------------------------------------------------------------------
def global_cos_reference(txt, cld, pool="mean", eps=1e-8):
    if pool in ("mean", "avg"):
        t = jnp.mean(txt, axis=-2)
        c = jnp.mean(cld, axis=-2)
    else:
        t = jnp.max(txt, axis=-2)
        c = jnp.max(cld, axis=-2)
    t = t / jnp.maximum(jnp.linalg.norm(t, axis=-1, keepdims=True), eps)
    c = c / jnp.maximum(jnp.linalg.norm(c, axis=-1, keepdims=True), eps)
    return t @ c.T


if __name__ == "__main__":
    key = jax.random.PRNGKey(0)
    k1, k2, k3, k4 = jax.random.split(key, 4)

    # Case 1: tiny, module-scale shapes (B < 8 -> full-dim blocks, no padding).
    txt_a = jax.random.normal(k1, (2, 8, 32), dtype=jnp.float32)
    cld_a = jax.random.normal(k2, (4, 10, 32), dtype=jnp.float32)
    # Case 2: exercises cdiv grids / partial last batch block (18 % 16 != 0).
    txt_b = jax.random.normal(k3, (18, 24, 128), dtype=jnp.float32)
    cld_b = jax.random.normal(k4, (7, 12, 128), dtype=jnp.float32)

    ok = True
    for (txt, cld) in ((txt_a, cld_a), (txt_b, cld_b)):
        for pool in ("mean", "max"):
            out = jax.block_until_ready(global_cos(txt, cld, pool=pool, cross_sim=True))
            ref = global_cos_reference(txt, cld, pool=pool)
            ok &= out.shape == (txt.shape[0], cld.shape[0])
            ok &= bool(jnp.allclose(out, ref, atol=1e-5, rtol=1e-5))

    assert ok, "mismatch vs reference"
    print("KERNEL_OK")
</pallas_src>

<mosaic_0001>
module attributes {stable_mosaic.version = 11 : i64} {
  func.func @_pool_norm_kernel(%arg0: i32, %arg1: i32, %arg2: memref<2x8x32xf32, #tpu.memory_space<vmem>>, %arg3: memref<2x32xf32, #tpu.memory_space<vmem>>, %arg4: memref<2x32xf32, #tpu.memory_space<vmem>>) attributes {dimension_semantics = [#tpu.dimension_semantics<parallel>, #tpu.dimension_semantics<arbitrary>], iteration_bounds = array<i64: 1, 1>, scalar_prefetch = 0 : i64, scratch_operands = 1 : i64, tpu.core_type = #tpu.core_type<tc>, window_params = [{transform_indices = @transform_0, window_bounds = array<i64: 2, 8, 32>}, {transform_indices = @transform_1, window_bounds = array<i64: 2, 32>}]} {
    %c0_i32 = arith.constant 0 : i32
    %0 = arith.cmpi eq, %arg1, %c0_i32 : i32
    %1 = arith.extui %0 : i1 to i32
    %c0_i32_0 = arith.constant 0 : i32
    %2 = arith.cmpi ne, %1, %c0_i32_0 : i32
    scf.if %2 {
      %cst_9 = arith.constant 0.000000e+00 : f32
      %11 = vector.broadcast %cst_9 : f32 to vector<2x32xf32>
      %c0_10 = arith.constant 0 : index
      %c0_11 = arith.constant 0 : index
      %12 = vector.load %arg4[%c0_10, %c0_11] : memref<2x32xf32, #tpu.memory_space<vmem>>, vector<2x32xf32>
      tpu.vector_store %arg4[%c0_10, %c0_11], %11 {strides = array<i32>} : memref<2x32xf32, #tpu.memory_space<vmem>>, vector<2x32xf32>,
    } else {
    }
    %c0 = arith.constant 0 : index
    %c0_1 = arith.constant 0 : index
    %c0_2 = arith.constant 0 : index
    %3 = vector.load %arg2[%c0, %c0_1, %c0_2] : memref<2x8x32xf32, #tpu.memory_space<vmem>>, vector<2x8x32xf32>
    %c0_3 = arith.constant 0 : index
    %c0_4 = arith.constant 0 : index
    %4 = vector.load %arg4[%c0_3, %c0_4] : memref<2x32xf32, #tpu.memory_space<vmem>>, vector<2x32xf32>
    %cst = arith.constant dense<0.000000e+00> : vector<2x32xf32>
    %5 = vector.multi_reduction <add>, %3, %cst [1] : vector<2x8x32xf32> to vector<2x32xf32>
    %6 = arith.addf %4, %5 : vector<2x32xf32>
    %c0_5 = arith.constant 0 : index
    %c0_6 = arith.constant 0 : index
    %7 = vector.load %arg4[%c0_5, %c0_6] : memref<2x32xf32, #tpu.memory_space<vmem>>, vector<2x32xf32>
    tpu.vector_store %arg4[%c0_5, %c0_6], %6 {strides = array<i32>} : memref<2x32xf32, #tpu.memory_space<vmem>>, vector<2x32xf32>,
    %c0_i32_7 = arith.constant 0 : i32
    %8 = arith.cmpi eq, %arg1, %c0_i32_7 : i32
    %9 = arith.extui %8 : i1 to i32
    %c0_i32_8 = arith.constant 0 : i32
    %10 = arith.cmpi ne, %9, %c0_i32_8 : i32
    scf.if %10 {
      %c0_9 = arith.constant 0 : index
      %c0_10 = arith.constant 0 : index
      %11 = vector.load %arg4[%c0_9, %c0_10] : memref<2x32xf32, #tpu.memory_space<vmem>>, vector<2x32xf32>
      %cst_11 = arith.constant 1.250000e-01 : f32
      %12 = vector.broadcast %cst_11 : f32 to vector<2x32xf32>
      %13 = arith.mulf %11, %12 : vector<2x32xf32>
      %14 = arith.mulf %13, %13 : vector<2x32xf32>
      %cst_12 = arith.constant dense<0.000000e+00> : vector<2xf32>
      %15 = vector.multi_reduction <add>, %14, %cst_12 [1] : vector<2x32xf32> to vector<2xf32>
      %16 = vector.shape_cast %15 : vector<2xf32> to vector<2x1xf32>
      %17 = math.sqrt %16 : vector<2x1xf32>
      %cst_13 = arith.constant 9.99999993E-9 : f32
      %18 = vector.broadcast %cst_13 : f32 to vector<2x1xf32>
      %19 = arith.maximumf %17, %18 : vector<2x1xf32>
      %20 = vector.broadcast %19 : vector<2x1xf32> to vector<2x32xf32>
      %21 = arith.divf %13, %20 : vector<2x32xf32>
      %c0_14 = arith.constant 0 : index
      %c0_15 = arith.constant 0 : index
      %22 = vector.load %arg3[%c0_14, %c0_15] : memref<2x32xf32, #tpu.memory_space<vmem>>, vector<2x32xf32>
      tpu.vector_store %arg3[%c0_14, %c0_15], %21 {strides = array<i32>} : memref<2x32xf32, #tpu.memory_space<vmem>>, vector<2x32xf32>,
    } else {
    }
    return
  }
  func.func @transform_0(%arg0: i32, %arg1: i32) -> (i32, i32, i32) {
    %c0_i32 = arith.constant 0 : i32
    %c0_i32_0 = arith.constant 0 : i32
    return %arg0, %arg1, %c0_i32 : i32, i32, i32
  }
  func.func @transform_1(%arg0: i32, %arg1: i32) -> (i32, i32) {
    %c0_i32 = arith.constant 0 : i32
    %c0_i32_0 = arith.constant 0 : i32
    return %arg0, %c0_i32 : i32, i32
  }
}

</mosaic_0001>

<bundles_post_ra>
// kernel: tpu_custom_call.1
= control target key start
LH: loop header
LB: loop body
LE: loop exit
PB: predicated region body
PF: predicated region fallthrough
CT: control target
= control target key end

     0   :  { %6 = vsyncpa [#allocation4], 0  ;;  %s198_s0 = inlined_call_operand.hbm [shape: f32[2,8,32], index: 0, kind: input, shape index: {}]   ;;  %s199_s1 = inlined_call_operand.hbm [shape: f32[2,32], index: 1, kind: output, shape index: {}]  }
   0x1   :  { %7 = vsyncpa [#allocation5], 0  ;;  %s12_s8 = sshll.u32 %s198_s0, 4  ;;  %s173_s9 = smov [#allocation3]   ;;  %s13_s8 = int_to_ptr.hbm [resolvable:$true] %s12_s8 }
   0x2   :  { %s14_s10 = sshll.u32 %s173_s9, 4  ;;  %s174_s11 = smov 128   ;;  %s15_s10 = int_to_ptr.vmem [resolvable:$true] %s14_s10 }
   0x3   :  { %s175_s12 = smov 8  }
   0x4   :  { %20 = dma.hbm_to_vmem [thread:$0]  %s13_s8, 256, %s15_s10, [#allocation4], %s174_s11, %s174_s11, %s175_s12  }
   0x5   :  { %169 = dma.done.wait [#allocation4], 256  }
   0x6   :  { %170 = vsyncadd [#allocation4], 4294967040  ;;  %vm29_vm0 = vcmask 254976   ;;  %v176_v0 = vmov 0.0   ;;  %vm34_vm1 = vcmask 261120   ;;  %v31_v1 = vld [vmem:[#allocation3] sm:$0xff] }
   0x7   :  { %30 = vst.msk [vmem:[#allocation2] sm:$0x3] %vm29_vm0, %v176_v0  ;;  %v32_v2 = vld [vmem:[#allocation3 + $0x8] sm:$0xff]  ;;  %v35_v3 = vsel %vm34_vm1, %v31_v1, 0.0  ;;  %vm51_vm2 = vcmask 1041409   ;;  %s177_s0 = smov [#allocation6]  }
   0x8   :  { %v42_v4 = vsel %vm34_vm1, %v32_v2, 0.0  ;;  %v36_v5 = vrot.slane %v35_v3, 4  ;;  %s100_s13 = sshll.u32 %s177_s0, 4  ;;  %s102_s16 = sshll.u32 %s199_s1, 4  ;;  %s101_s13 = int_to_ptr.vmem [resolvable:$true] %s100_s13  ;;  %s103_s16 = int_to_ptr.hbm [resolvable:$true] %s102_s16 }
   0x9   :  { %v43_v6 = vrot.slane %v42_v4, 4 }
   0xa   :  { %v37_v7 = vadd.f32 %v36_v5, %v35_v3 }
   0xb   :  { %v44_v8 = vadd.f32 %v43_v6, %v42_v4 }
   0xc   :  { %v38_v9 = vrot.slane %v37_v7, 2 }
   0xd   :  { %v45_v10 = vrot.slane %v44_v8, 2 }
   0xe   :  { %v39_v11 = vadd.f32 %v38_v9, %v37_v7  ;;  %v33_v15 = vld [vmem:[#allocation2] sm:$0x3] }
   0xf   :  { %v46_v12 = vadd.f32 %v45_v10, %v44_v8 }
  0x10   :  { %v40_v13 = vrot.slane %v39_v11, 1 }
  0x11   :  { %v47_v14 = vrot.slane %v46_v12, 1 }
  0x12   :  { %v41_v16 = vadd.f32 %v40_v13, %v39_v11 }
  0x13   :  { %v48_v17 = vadd.f32 %v47_v14, %v46_v12 }
  0x15   :  { %v52_v18 = vsel %vm51_vm2, %v48_v17, %v41_v16 }
  0x16   :  { %v54_v19 = vadd.f32 %v52_v18, %v33_v15 }
  0x18   :  { %56 = vst.msk [vmem:[#allocation2] sm:$0x3] %vm29_vm0, %v54_v19 }
  0x1f   :  { %v60_v20 = vld [vmem:[#allocation2] sm:$0x3] }
  0x20   :  { %v61_v21 = vmul.f32 0.125, %v60_v20 }
  0x22   :  { %v62_v22 = vmul.f32 %v61_v21, %v61_v21 }
  0x24   :  { %v63_v23 = vsel %vm29_vm0, %v62_v22, 0.0 }
  0x25   :  { %64 = vadd.xlane.f32.xlu0 %v63_v23 }
  0x98   :  { %v65_v24 = vpop.xlane.xlu0 %64 }
  0x99   :  { %117 = vrsqrt.f32 %v65_v24  ;;  %vm73_vm3 = vcmp.eq.f32.partialorder %v65_v24, inf  ;;  %v76_v32 = vand.u32 2147483648, %v65_v24  ;;  %vm75_vm4 = vcmp.eq.f32.partialorder %v65_v24, 0.0 }
  0x9f   :  { %v118_v25 = vpop.eup %117 }
  0xa0   :  { %v67_v26 = vmul.f32 %v118_v25, %v65_v24 }
  0xa2   :  { %v68_v27 = vmul.f32 %v118_v25, %v67_v26 }
  0xa4   :  { %v69_v28 = vmul.f32 0.5, %v68_v27 }
  0xa6   :  { %v70_v29 = vsub.f32 1.5, %v69_v28 }
  0xa8   :  { %v71_v30 = vmul.f32 %v118_v25, %v70_v29 }
  0xaa   :  { %v72_v31 = vmul.f32 %v71_v30, %v65_v24 }
  0xac   :  { %v74_v33 = vsel %vm73_vm3, %v65_v24, %v72_v31 }
  0xad   :  { %v77_v34 = vsel %vm75_vm4, %v76_v32, %v74_v33 }
  0xae   :  { %v78_v35 = vmax.f32 %v77_v34, 1e-08 }
  0xb0   :  { %119 = vrcp.f32 %v78_v35  ;;  %v90_v39 = vand.u32 2147483648, %v78_v35  ;;  %v88_v41 = vand.u32 2147483647, %v78_v35  ;;  %vm84_vm6 = vweird.f32 %v78_v35 }
  0xb2   :  { %v91_v43 = vor.u32 1.1754944e-38, %v90_v39  ;;  %vm89_vm8 = vcmp.eq.f32.partialorder %v88_v41, 8.507059e+37 }
  0xb6   :  { %v120_v36 = vpop.eup %119 }
  0xb7   :  { %v80_v37 = vmul.f32 %v120_v36, %v78_v35  ;;  %vm85_vm5 = vweird.f32 %v120_v36 }
  0xb8   :  { %vm86_vm7 = vmor %vm84_vm6, %vm85_vm5 }
  0xb9   :  { %v81_v38 = vsub.f32 1.0, %v80_v37 }
  0xbb   :  { %v82_v40 = vmul.f32 %v120_v36, %v81_v38 }
  0xbd   :  { %v83_v42 = vadd.f32 %v120_v36, %v82_v40 }
  0xbf   :  { %v87_v44 = vsel %vm86_vm7, %v120_v36, %v83_v42 }
  0xc0   :  { %v92_v45 = vsel %vm89_vm8, %v91_v43, %v87_v44 }
  0xc1   :  { %v93_v46 = vmul.f32 %v92_v45, %v61_v21 }
  0xc3   :  { %94 = vst.msk [vmem:[#allocation6] sm:$0x3] %vm29_vm0, %v93_v46 }
  0xc4   :  { %105 = dma.vmem_to_hbm [thread:$0]  %s101_s13, 32, %s103_s16, [#allocation5]  }
  0xc5   :  { %171 = dma.done.wait [#allocation5], 32  }
  0xc6   :  { %172 = vsyncadd [#allocation5], 4294967264 }
  0xc7   :  { %110 = vsyncpa [#allocation4], 1 }
  0xc8   :  { %111 = vsyncpa [#allocation5], 1 }

</bundles_post_ra>
